<compile_context>
chip_gen: v6e
topology: v6e:2x2x1
jax: 0.10.0
libtpu: 0.0.40
codegen_flags: <defaults>
</compile_context>

<pallas_src>
from functools import partial

import jax
import jax.numpy as jnp
from jax import lax
from jax.experimental import pallas as pl
from jax.experimental.pallas import tpu as pltpu


def attention_kqv_kernel(x_ref, y_ref, wkv_ref, wq_ref, wo_ref, bo_ref, o_ref,
                         *, heads, dim_head):
    inner = heads * dim_head

    x = x_ref[...]                       # (N, DIM) bf16 -- keys/values source
    y = y_ref[...]                       # (M, DIM) bf16 -- queries source

    # Fused, lane-dense projections (bias-free Linear); softmax scale is
    # pre-folded into W_q on the host.  bf16 MXU inputs, f32 accumulate,
    # single cast back to bf16 per projection.
    kv = jnp.dot(x, wkv_ref[...],
                 preferred_element_type=jnp.float32).astype(jnp.bfloat16)   # (N, 2*inner)
    q = jnp.dot(y, wq_ref[...],
                preferred_element_type=jnp.float32).astype(jnp.bfloat16)    # (M, inner)
    k = kv[:, :inner]                    # (N, inner)
    v = kv[:, inner:]                    # (N, inner)

    # Per-head attention, heads statically unrolled (static lane slices).
    outs = []
    for h in range(heads):
        lo, hi = h * dim_head, (h + 1) * dim_head
        qh = q[:, lo:hi]                 # (M, d)
        kh = k[:, lo:hi]                 # (N, d)
        vh = v[:, lo:hi]                 # (N, d)

        # scores: qh @ kh^T, f32 accumulation
        s = lax.dot_general(qh, kh, (((1,), (1,)), ((), ())),
                            preferred_element_type=jnp.float32)             # (M, N)

        # numerically-stable softmax in f32; divide via EUP approx reciprocal
        s = s - jnp.max(s, axis=-1, keepdims=True)
        e = jnp.exp(s)
        p = e * pl.reciprocal(jnp.sum(e, axis=-1, keepdims=True), approx=True)

        outs.append(jnp.dot(p.astype(jnp.bfloat16), vh,
                            preferred_element_type=jnp.float32))            # (M, d)

    # Concatenate heads -> one lane-dense K=inner output projection.
    out = jnp.concatenate(outs, axis=-1).astype(jnp.bfloat16)               # (M, inner)
    proj = jnp.dot(out, wo_ref[...], preferred_element_type=jnp.float32)    # (M, DIM)

    # to_out bias; Dropout(p=0 / eval) is identity.
    o_ref[...] = (proj + bo_ref[...]).astype(o_ref.dtype)


@partial(jax.jit, static_argnames=("heads", "dim_head"))
def attention_kqv(x, y, wkv, wq, wo, bo, *, heads, dim_head):
    b, n, dim = x.shape
    _, m, _ = y.shape
    inner = heads * dim_head
    scale = float(dim_head) ** -0.5

    cdt = jnp.bfloat16
    x_b = x.astype(cdt)
    y_b = y.astype(cdt)

    # Host-side weight prep (constant-folded under jit): keep natural layouts,
    # fold the softmax scale into W_q, cast to bf16 for the MXU.
    wkv_b = wkv.astype(cdt)                       # (dim, 2*inner)
    wq_b = (wq * scale).astype(cdt)               # (dim, inner), scale folded
    wo_b = wo.astype(cdt)                         # (inner, dim)
    bo_f = bo.reshape(1, dim).astype(jnp.float32)

    kernel = partial(attention_kqv_kernel, heads=heads, dim_head=dim_head)

    flops = b * (2 * n * dim * 2 * inner          # x @ W_kv
                 + 2 * m * dim * inner            # y @ W_q
                 + 4 * heads * m * n * dim_head   # scores + attn @ v
                 + 2 * m * inner * dim)           # output projection
    transcendentals = b * heads * m * n           # exp
    bytes_accessed = (x_b.size * 2 + y_b.size * 2
                      + (wkv_b.size + wq_b.size + wo_b.size) * 2
                      + bo_f.size * 4
                      + b * m * dim * x.dtype.itemsize)

    return pl.pallas_call(
        kernel,
        out_shape=jax.ShapeDtypeStruct((b, m, dim), x.dtype),
        grid=(b,),
        in_specs=[
            pl.BlockSpec((None, n, dim), lambda i: (i, 0, 0)),     # x[b]
            pl.BlockSpec((None, m, dim), lambda i: (i, 0, 0)),     # y[b]
            pl.BlockSpec((dim, 2 * inner), lambda i: (0, 0)),      # W_kv (resident)
            pl.BlockSpec((dim, inner), lambda i: (0, 0)),          # W_q * scale
            pl.BlockSpec((inner, dim), lambda i: (0, 0)),          # W_o
            pl.BlockSpec((1, dim), lambda i: (0, 0)),              # b_o
        ],
        out_specs=pl.BlockSpec((None, m, dim), lambda i: (i, 0, 0)),
        compiler_params=pltpu.CompilerParams(
            dimension_semantics=("parallel",)),
        cost_estimate=pl.CostEstimate(flops=flops,
                                      transcendentals=transcendentals,
                                      bytes_accessed=bytes_accessed),
    )(x_b, y_b, wkv_b, wq_b, wo_b, bo_f)


def reference(x, y, wkv, wq, wo, bo, *, heads, dim_head):
    """Pure-JAX f32 mirror of the PyTorch forward (for verification)."""
    b, n, _ = x.shape
    _, m, _ = y.shape
    inner = heads * dim_head
    kv = x @ wkv
    k, v = kv[..., :inner], kv[..., inner:]
    q = y @ wq

    def split(t):
        bb, nn, _ = t.shape
        return t.reshape(bb, nn, heads, dim_head).transpose(0, 2, 1, 3)

    qh, kh, vh = split(q), split(k), split(v)
    dots = jnp.einsum('bhid,bhjd->bhij', qh, kh) * (dim_head ** -0.5)
    attn = jax.nn.softmax(dots, axis=-1)
    out = jnp.einsum('bhij,bhjd->bhid', attn, vh)
    out = out.transpose(0, 2, 1, 3).reshape(b, m, inner)
    return out @ wo + bo


if __name__ == "__main__":
    # small shapes consistent with the module: dim=32, heads=4, dim_head=16
    B, N, M, DIM = 2, 8, 8, 32
    HEADS, DIM_HEAD = 4, 16
    INNER = HEADS * DIM_HEAD

    key = jax.random.PRNGKey(0)
    kx, ky, kkv, kq, kwo, kbo = jax.random.split(key, 6)

    x = jax.random.normal(kx, (B, N, DIM), dtype=jnp.float32)   # kv source
    y = jax.random.normal(ky, (B, M, DIM), dtype=jnp.float32)   # q source

    # deterministic synthetic weights, stored as (in_features, out_features)
    wkv = jax.random.normal(kkv, (DIM, 2 * INNER), dtype=jnp.float32) * 0.05
    wq = jax.random.normal(kq, (DIM, INNER), dtype=jnp.float32) * 0.05
    wo = jax.random.normal(kwo, (INNER, DIM), dtype=jnp.float32) * 0.05
    bo = jax.random.normal(kbo, (1, DIM), dtype=jnp.float32) * 0.05

    out = attention_kqv(x, y, wkv, wq, wo, bo, heads=HEADS, dim_head=DIM_HEAD)
    out = jax.block_until_ready(out)

    ref = reference(x, y, wkv, wq, wo, bo[0], heads=HEADS, dim_head=DIM_HEAD)
    assert out.shape == (B, M, DIM)
    # bf16 MXU inputs -> compare against the f32 reference with bf16 tolerance
    assert jnp.allclose(out, ref, atol=2e-2, rtol=2e-2), "mismatch vs JAX reference"

    print("KERNEL_OK")
</pallas_src>

<mosaic_0001>
module attributes {stable_mosaic.version = 11 : i64} {
  func.func @attention_kqv_kernel(%arg0: i32, %arg1: memref<1x8x32xbf16, #tpu.memory_space<vmem>>, %arg2: memref<1x8x32xbf16, #tpu.memory_space<vmem>>, %arg3: memref<32x128xbf16, #tpu.memory_space<vmem>>, %arg4: memref<32x64xbf16, #tpu.memory_space<vmem>>, %arg5: memref<64x32xbf16, #tpu.memory_space<vmem>>, %arg6: memref<1x32xf32, #tpu.memory_space<vmem>>, %arg7: memref<1x8x32xf32, #tpu.memory_space<vmem>>) attributes {dimension_semantics = [#tpu.dimension_semantics<parallel>], iteration_bounds = array<i64: 2>, scalar_prefetch = 0 : i64, scratch_operands = 0 : i64, tpu.core_type = #tpu.core_type<tc>, window_params = [{transform_indices = @transform_0, window_bounds = array<i64: 1, 8, 32>}, {transform_indices = @transform_1, window_bounds = array<i64: 1, 8, 32>}, {pipeline_mode = #tpu.pipeline_mode<synchronous>, transform_indices = @transform_2, window_bounds = array<i64: 32, 128>}, {pipeline_mode = #tpu.pipeline_mode<synchronous>, transform_indices = @transform_3, window_bounds = array<i64: 32, 64>}, {pipeline_mode = #tpu.pipeline_mode<synchronous>, transform_indices = @transform_4, window_bounds = array<i64: 64, 32>}, {pipeline_mode = #tpu.pipeline_mode<synchronous>, transform_indices = @transform_5, window_bounds = array<i64: 1, 32>}, {transform_indices = @transform_6, window_bounds = array<i64: 1, 8, 32>}]} {
    %c0 = arith.constant 0 : index
    %c0_0 = arith.constant 0 : index
    %c0_1 = arith.constant 0 : index
    %0 = vector.load %arg1[%c0, %c0_0, %c0_1] : memref<1x8x32xbf16, #tpu.memory_space<vmem>>, vector<1x8x32xbf16>
    %1 = vector.shape_cast %0 : vector<1x8x32xbf16> to vector<8x32xbf16>
    %c0_2 = arith.constant 0 : index
    %c0_3 = arith.constant 0 : index
    %c0_4 = arith.constant 0 : index
    %2 = vector.load %arg2[%c0_2, %c0_3, %c0_4] : memref<1x8x32xbf16, #tpu.memory_space<vmem>>, vector<1x8x32xbf16>
    %3 = vector.shape_cast %2 : vector<1x8x32xbf16> to vector<8x32xbf16>
    %c0_5 = arith.constant 0 : index
    %c0_6 = arith.constant 0 : index
    %4 = vector.load %arg3[%c0_5, %c0_6] : memref<32x128xbf16, #tpu.memory_space<vmem>>, vector<32x128xbf16>
    %cst = arith.constant dense<0.000000e+00> : vector<8x128xf32>
    %5 = tpu.matmul %1, %4, %cst {dimension_numbers = #tpu.dot_dimension_numbers<[1], [0], [0], [1], [0, 0, 1, 1], [], []>} : vector<8x32xbf16>, vector<32x128xbf16>, vector<8x128xf32> -> vector<8x128xf32>
    %6 = arith.truncf %5 : vector<8x128xf32> to vector<8x128xbf16>
    %c0_7 = arith.constant 0 : index
    %c0_8 = arith.constant 0 : index
    %7 = vector.load %arg4[%c0_7, %c0_8] : memref<32x64xbf16, #tpu.memory_space<vmem>>, vector<32x64xbf16>
    %cst_9 = arith.constant dense<0.000000e+00> : vector<8x64xf32>
    %8 = tpu.matmul %3, %7, %cst_9 {dimension_numbers = #tpu.dot_dimension_numbers<[1], [0], [0], [1], [0, 0, 1, 1], [], []>} : vector<8x32xbf16>, vector<32x64xbf16>, vector<8x64xf32> -> vector<8x64xf32>
    %9 = arith.truncf %8 : vector<8x64xf32> to vector<8x64xbf16>
    %10 = vector.extract_strided_slice %6 {offsets = [0, 0], sizes = [8, 64], strides = [1, 1]} : vector<8x128xbf16> to vector<8x64xbf16>
    %11 = vector.extract_strided_slice %6 {offsets = [0, 64], sizes = [8, 64], strides = [1, 1]} : vector<8x128xbf16> to vector<8x64xbf16>
    %12 = vector.extract_strided_slice %9 {offsets = [0, 0], sizes = [8, 16], strides = [1, 1]} : vector<8x64xbf16> to vector<8x16xbf16>
    %13 = vector.extract_strided_slice %10 {offsets = [0, 0], sizes = [8, 16], strides = [1, 1]} : vector<8x64xbf16> to vector<8x16xbf16>
    %14 = vector.extract_strided_slice %11 {offsets = [0, 0], sizes = [8, 16], strides = [1, 1]} : vector<8x64xbf16> to vector<8x16xbf16>
    %cst_10 = arith.constant dense<0.000000e+00> : vector<8x8xf32>
    %15 = tpu.matmul %12, %13, %cst_10 {dimension_numbers = #tpu.dot_dimension_numbers<[1], [1], [0], [0], [0, 0, 1, 0], [], []>} : vector<8x16xbf16>, vector<8x16xbf16>, vector<8x8xf32> -> vector<8x8xf32>
    %cst_11 = arith.constant dense<0xFF800000> : vector<8xf32>
    %16 = vector.multi_reduction <maximumf>, %15, %cst_11 [1] : vector<8x8xf32> to vector<8xf32>
    %17 = vector.shape_cast %16 : vector<8xf32> to vector<8x1xf32>
    %18 = vector.broadcast %17 : vector<8x1xf32> to vector<8x8xf32>
    %19 = arith.subf %15, %18 : vector<8x8xf32>
    %20 = math.exp %19 : vector<8x8xf32>
    %cst_12 = arith.constant dense<0.000000e+00> : vector<8xf32>
    %21 = vector.multi_reduction <add>, %20, %cst_12 [1] : vector<8x8xf32> to vector<8xf32>
    %22 = vector.shape_cast %21 : vector<8xf32> to vector<8x1xf32>
    %23 = tpu.reciprocal %22 {approx = true} : vector<8x1xf32> -> vector<8x1xf32>
    %24 = vector.broadcast %23 : vector<8x1xf32> to vector<8x8xf32>
    %25 = arith.mulf %20, %24 : vector<8x8xf32>
    %26 = arith.truncf %25 : vector<8x8xf32> to vector<8x8xbf16>
    %cst_13 = arith.constant dense<0.000000e+00> : vector<8x16xf32>
    %27 = tpu.matmul %26, %14, %cst_13 {dimension_numbers = #tpu.dot_dimension_numbers<[1], [0], [0], [1], [0, 0, 1, 1], [], []>} : vector<8x8xbf16>, vector<8x16xbf16>, vector<8x16xf32> -> vector<8x16xf32>
    %28 = vector.extract_strided_slice %9 {offsets = [0, 16], sizes = [8, 16], strides = [1, 1]} : vector<8x64xbf16> to vector<8x16xbf16>
    %29 = vector.extract_strided_slice %10 {offsets = [0, 16], sizes = [8, 16], strides = [1, 1]} : vector<8x64xbf16> to vector<8x16xbf16>
    %30 = vector.extract_strided_slice %11 {offsets = [0, 16], sizes = [8, 16], strides = [1, 1]} : vector<8x64xbf16> to vector<8x16xbf16>
    %cst_14 = arith.constant dense<0.000000e+00> : vector<8x8xf32>
    %31 = tpu.matmul %28, %29, %cst_14 {dimension_numbers = #tpu.dot_dimension_numbers<[1], [1], [0], [0], [0, 0, 1, 0], [], []>} : vector<8x16xbf16>, vector<8x16xbf16>, vector<8x8xf32> -> vector<8x8xf32>
    %cst_15 = arith.constant dense<0xFF800000> : vector<8xf32>
    %32 = vector.multi_reduction <maximumf>, %31, %cst_15 [1] : vector<8x8xf32> to vector<8xf32>
    %33 = vector.shape_cast %32 : vector<8xf32> to vector<8x1xf32>
    %34 = vector.broadcast %33 : vector<8x1xf32> to vector<8x8xf32>
    %35 = arith.subf %31, %34 : vector<8x8xf32>
    %36 = math.exp %35 : vector<8x8xf32>
    %cst_16 = arith.constant dense<0.000000e+00> : vector<8xf32>
    %37 = vector.multi_reduction <add>, %36, %cst_16 [1] : vector<8x8xf32> to vector<8xf32>
    %38 = vector.shape_cast %37 : vector<8xf32> to vector<8x1xf32>
    %39 = tpu.reciprocal %38 {approx = true} : vector<8x1xf32> -> vector<8x1xf32>
    %40 = vector.broadcast %39 : vector<8x1xf32> to vector<8x8xf32>
    %41 = arith.mulf %36, %40 : vector<8x8xf32>
    %42 = arith.truncf %41 : vector<8x8xf32> to vector<8x8xbf16>
    %cst_17 = arith.constant dense<0.000000e+00> : vector<8x16xf32>
    %43 = tpu.matmul %42, %30, %cst_17 {dimension_numbers = #tpu.dot_dimension_numbers<[1], [0], [0], [1], [0, 0, 1, 1], [], []>} : vector<8x8xbf16>, vector<8x16xbf16>, vector<8x16xf32> -> vector<8x16xf32>
    %44 = vector.extract_strided_slice %9 {offsets = [0, 32], sizes = [8, 16], strides = [1, 1]} : vector<8x64xbf16> to vector<8x16xbf16>
    %45 = vector.extract_strided_slice %10 {offsets = [0, 32], sizes = [8, 16], strides = [1, 1]} : vector<8x64xbf16> to vector<8x16xbf16>
    %46 = vector.extract_strided_slice %11 {offsets = [0, 32], sizes = [8, 16], strides = [1, 1]} : vector<8x64xbf16> to vector<8x16xbf16>
    %cst_18 = arith.constant dense<0.000000e+00> : vector<8x8xf32>
    %47 = tpu.matmul %44, %45, %cst_18 {dimension_numbers = #tpu.dot_dimension_numbers<[1], [1], [0], [0], [0, 0, 1, 0], [], []>} : vector<8x16xbf16>, vector<8x16xbf16>, vector<8x8xf32> -> vector<8x8xf32>
    %cst_19 = arith.constant dense<0xFF800000> : vector<8xf32>
    %48 = vector.multi_reduction <maximumf>, %47, %cst_19 [1] : vector<8x8xf32> to vector<8xf32>
    %49 = vector.shape_cast %48 : vector<8xf32> to vector<8x1xf32>
    %50 = vector.broadcast %49 : vector<8x1xf32> to vector<8x8xf32>
    %51 = arith.subf %47, %50 : vector<8x8xf32>
    %52 = math.exp %51 : vector<8x8xf32>
    %cst_20 = arith.constant dense<0.000000e+00> : vector<8xf32>
    %53 = vector.multi_reduction <add>, %52, %cst_20 [1] : vector<8x8xf32> to vector<8xf32>
    %54 = vector.shape_cast %53 : vector<8xf32> to vector<8x1xf32>
    %55 = tpu.reciprocal %54 {approx = true} : vector<8x1xf32> -> vector<8x1xf32>
    %56 = vector.broadcast %55 : vector<8x1xf32> to vector<8x8xf32>
    %57 = arith.mulf %52, %56 : vector<8x8xf32>
    %58 = arith.truncf %57 : vector<8x8xf32> to vector<8x8xbf16>
    %cst_21 = arith.constant dense<0.000000e+00> : vector<8x16xf32>
    %59 = tpu.matmul %58, %46, %cst_21 {dimension_numbers = #tpu.dot_dimension_numbers<[1], [0], [0], [1], [0, 0, 1, 1], [], []>} : vector<8x8xbf16>, vector<8x16xbf16>, vector<8x16xf32> -> vector<8x16xf32>
    %60 = vector.extract_strided_slice %9 {offsets = [0, 48], sizes = [8, 16], strides = [1, 1]} : vector<8x64xbf16> to vector<8x16xbf16>
    %61 = vector.extract_strided_slice %10 {offsets = [0, 48], sizes = [8, 16], strides = [1, 1]} : vector<8x64xbf16> to vector<8x16xbf16>
    %62 = vector.extract_strided_slice %11 {offsets = [0, 48], sizes = [8, 16], strides = [1, 1]} : vector<8x64xbf16> to vector<8x16xbf16>
    %cst_22 = arith.constant dense<0.000000e+00> : vector<8x8xf32>
    %63 = tpu.matmul %60, %61, %cst_22 {dimension_numbers = #tpu.dot_dimension_numbers<[1], [1], [0], [0], [0, 0, 1, 0], [], []>} : vector<8x16xbf16>, vector<8x16xbf16>, vector<8x8xf32> -> vector<8x8xf32>
    %cst_23 = arith.constant dense<0xFF800000> : vector<8xf32>
    %64 = vector.multi_reduction <maximumf>, %63, %cst_23 [1] : vector<8x8xf32> to vector<8xf32>
    %65 = vector.shape_cast %64 : vector<8xf32> to vector<8x1xf32>
    %66 = vector.broadcast %65 : vector<8x1xf32> to vector<8x8xf32>
    %67 = arith.subf %63, %66 : vector<8x8xf32>
    %68 = math.exp %67 : vector<8x8xf32>
    %cst_24 = arith.constant dense<0.000000e+00> : vector<8xf32>
    %69 = vector.multi_reduction <add>, %68, %cst_24 [1] : vector<8x8xf32> to vector<8xf32>
    %70 = vector.shape_cast %69 : vector<8xf32> to vector<8x1xf32>
    %71 = tpu.reciprocal %70 {approx = true} : vector<8x1xf32> -> vector<8x1xf32>
    %72 = vector.broadcast %71 : vector<8x1xf32> to vector<8x8xf32>
    %73 = arith.mulf %68, %72 : vector<8x8xf32>
    %74 = arith.truncf %73 : vector<8x8xf32> to vector<8x8xbf16>
    %cst_25 = arith.constant dense<0.000000e+00> : vector<8x16xf32>
    %75 = tpu.matmul %74, %62, %cst_25 {dimension_numbers = #tpu.dot_dimension_numbers<[1], [0], [0], [1], [0, 0, 1, 1], [], []>} : vector<8x8xbf16>, vector<8x16xbf16>, vector<8x16xf32> -> vector<8x16xf32>
    %76 = tpu.concatenate %27, %43, %59, %75 in 1 : vector<8x16xf32>, vector<8x16xf32>, vector<8x16xf32>, vector<8x16xf32> -> vector<8x64xf32>
    %77 = arith.truncf %76 : vector<8x64xf32> to vector<8x64xbf16>
    %c0_26 = arith.constant 0 : index
    %c0_27 = arith.constant 0 : index
    %78 = vector.load %arg5[%c0_26, %c0_27] : memref<64x32xbf16, #tpu.memory_space<vmem>>, vector<64x32xbf16>
    %cst_28 = arith.constant dense<0.000000e+00> : vector<8x32xf32>
    %79 = tpu.matmul %77, %78, %cst_28 {dimension_numbers = #tpu.dot_dimension_numbers<[1], [0], [0], [1], [0, 0, 1, 1], [], []>} : vector<8x64xbf16>, vector<64x32xbf16>, vector<8x32xf32> -> vector<8x32xf32>
    %c0_29 = arith.constant 0 : index
    %c0_30 = arith.constant 0 : index
    %80 = vector.load %arg6[%c0_29, %c0_30] : memref<1x32xf32, #tpu.memory_space<vmem>>, vector<1x32xf32>
    %81 = vector.broadcast %80 : vector<1x32xf32> to vector<8x32xf32>
    %82 = arith.addf %79, %81 : vector<8x32xf32>
    %c0_31 = arith.constant 0 : index
    %c0_32 = arith.constant 0 : index
    %c0_33 = arith.constant 0 : index
    %83 = vector.load %arg7[%c0_31, %c0_32, %c0_33] : memref<1x8x32xf32, #tpu.memory_space<vmem>>, vector<1x8x32xf32>
    %84 = vector.shape_cast %83 : vector<1x8x32xf32> to vector<8x32xf32>
    %85 = vector.shape_cast %82 : vector<8x32xf32> to vector<1x8x32xf32>
    tpu.vector_store %arg7[%c0_31, %c0_32, %c0_33], %85 {strides = array<i32>} : memref<1x8x32xf32, #tpu.memory_space<vmem>>, vector<1x8x32xf32>,
    return
  }
  func.func @transform_0(%arg0: i32) -> (i32, i32, i32) {
    %c0_i32 = arith.constant 0 : i32
    %c0_i32_0 = arith.constant 0 : i32
    %c0_i32_1 = arith.constant 0 : i32
    return %arg0, %c0_i32, %c0_i32_0 : i32, i32, i32
  }
  func.func @transform_1(%arg0: i32) -> (i32, i32, i32) {
    %c0_i32 = arith.constant 0 : i32
    %c0_i32_0 = arith.constant 0 : i32
    %c0_i32_1 = arith.constant 0 : i32
    return %arg0, %c0_i32, %c0_i32_0 : i32, i32, i32
  }
  func.func @transform_2(%arg0: i32) -> (i32, i32) {
    %c0_i32 = arith.constant 0 : i32
    %c0_i32_0 = arith.constant 0 : i32
    %c0_i32_1 = arith.constant 0 : i32
    return %c0_i32, %c0_i32_0 : i32, i32
  }
  func.func @transform_3(%arg0: i32) -> (i32, i32) {
    %c0_i32 = arith.constant 0 : i32
    %c0_i32_0 = arith.constant 0 : i32
    %c0_i32_1 = arith.constant 0 : i32
    return %c0_i32, %c0_i32_0 : i32, i32
  }
  func.func @transform_4(%arg0: i32) -> (i32, i32) {
    %c0_i32 = arith.constant 0 : i32
    %c0_i32_0 = arith.constant 0 : i32
    %c0_i32_1 = arith.constant 0 : i32
    return %c0_i32, %c0_i32_0 : i32, i32
  }
  func.func @transform_5(%arg0: i32) -> (i32, i32) {
    %c0_i32 = arith.constant 0 : i32
    %c0_i32_0 = arith.constant 0 : i32
    %c0_i32_1 = arith.constant 0 : i32
    return %c0_i32, %c0_i32_0 : i32, i32
  }
  func.func @transform_6(%arg0: i32) -> (i32, i32, i32) {
    %c0_i32 = arith.constant 0 : i32
    %c0_i32_0 = arith.constant 0 : i32
    %c0_i32_1 = arith.constant 0 : i32
    return %arg0, %c0_i32, %c0_i32_0 : i32, i32, i32
  }
}

</mosaic_0001>

<bundles_post_ra>
// kernel: attention_kqv.1
= control target key start
LH: loop header
LB: loop body
LE: loop exit
PB: predicated region body
PF: predicated region fallthrough
CT: control target
= control target key end

     0   :  { %11 = vsyncpa [#allocation3], 0  ;;  %s1540_s0 = inlined_call_operand.vmem [shape: bf16[2,8,32], index: 0, kind: input, shape index: {}]   ;;  %s1541_s1 = inlined_call_operand.vmem [shape: bf16[2,8,32], index: 1, kind: input, shape index: {}]   ;;  %s1542_s2 = inlined_call_operand.vmem [shape: bf16[32,128], index: 2, kind: input, shape index: {}]   ;;  %s1543_s3 = inlined_call_operand.vmem [shape: bf16[32,64], index: 3, kind: input, shape index: {}]   ;;  %s1544_s4 = inlined_call_operand.vmem [shape: bf16[64,32], index: 4, kind: input, shape index: {}]   ;;  %s1545_s5 = inlined_call_operand.vmem [shape: f32[1,32], index: 5, kind: input, shape index: {}]   ;;  %s1546_s6 = inlined_call_operand.hbm [shape: f32[2,8,32], index: 6, kind: output, shape index: {}]  }
   0x1   :  { %13 = vsyncpa [#allocation3 + $0x1], 0  ;;  %s1328_s21 = smov 0   ;;  %s1330_s22 = smov 0  }
   0x2   :  { %s1332_s23 = smov 0   ;;  %s1334_s24 = smov 0  }
   0x3 LB: > { %s1349_s25 = sadd.s32 4294967295, %s1281_s24   ;;  %s1015_s26 = sadd.s32 4294967294, %s1281_s24   ;;  %s1281_s24 = sphi %s1334_s24, %s1552_s24   ;;  %s1277_s23 = sphi %s1332_s23, %s1551_s23   ;;  %s1273_s22 = sphi %s1330_s22, %s1550_s22   ;;  %s1269_s21 = sphi %s1328_s21, %s1549_s21  }
   0x4   : > { %s1353_s27 = sadd.s32 1, %s1281_s24   ;;  %s162_s28 = sadd.s32 1, %s1277_s23 }
   0x5   : > { %s159_s29 = ssub.s32 %s1281_s24, %s1353_s27  ;;  %p172_p0 = scmp.ne.s32.totalorder %s1277_s23, %s1273_s22 }
   0x6   : > { %p160_p1 = scmp.eq.s32.totalorder %s159_s29, 0  ;;  %p173_p2 = scmp.eq.s32.totalorder %s1349_s25, 1 }
   0x7   : > { %p178_p3 = scmp.ne.s32.totalorder %s1273_s22, %s1269_s21  ;;  %p179_p4 = scmp.eq.s32.totalorder %s1015_s26, 1 }
   0x8   : > { %s1364_s30 = scalar_select %p160_p1, %s1277_s23, %s162_s28  }
   0x9   : > { %p1366_p5 = por %p173_p2, %p172_p0  ;;  %p1370_p6 = por %p179_p4, %p178_p3 }
   0xa   : > { %p1018_p7 = scmp.ge.s32.totalorder %s1281_s24, 1  ;;  %p223_p8 = scmp.lt.s32.totalorder %s1281_s24, 3 }
   0xc   : > { %p224_p9 = pnand %p1018_p7, %p223_p8 }
   0xd   : > { %p256_p10 = scmp.lt.s32.totalorder (!%p224_p9), %s1349_s25, 1  ;;  %s1285_s10 = smov (!%p224_p9), 96  }
   0xe   : > { %227 = sbr.rel (%p224_p9) target bundleno = 1395 (0x573), region = 44  ;;  %s1286_s11 = smov (!%p224_p9), 112  }
   0xf   : > { %s1287_s12 = smov (!%p224_p9), 80   ;;  %s1290_s15 = smov (!%p224_p9), 16  }
  0x10   : > { %s1291_s16 = smov (!%p224_p9), 48   ;;  %s1292_s26 = smov (!%p224_p9), [#allocation2]  }
  0x11   : > { %s1225_s28 = sshll.u32 (!%p224_p9), %s1292_s26, 4  ;;  %s1226_s28 = int_to_ptr.vmem [resolvable:$false] %s1225_s28 }
  0x12   : > { %s1227_s29 = scalar_lea.vmem (!%p224_p9), %s1226_s28, 256 }
  0x13   : > { %v1197_v0 = vld [vmem:[%s1542_s2 + $0x8] sm:$0xff]   ;;  %v1283_v1 = vmov 0.0   ;;  %v1198_v2 = vld [vmem:[%s1542_s2] sm:$0xff]   ;;  %vm1284_vm0 = vmmov 0   ;;  %s257_s13 = scalar_select %p256_p10, %s1349_s25, 1  ;;  %vm283_vm1 = vcmask 261120  }
  0x14   : > { %1073 = vmatprep.subr.bf16.mxu1 %v1283_v1  ;;  %1089 = vmatprep.subr.bf16.mxu0 %v1283_v1  ;;  %v1199_v3 = vld [vmem:[%s1543_s3 + $0x8] sm:$0xff]   ;;  %v1200_v5 = vld [vmem:[%s1543_s3] sm:$0xff]   ;;  %vm388_vm2 = vcmask 130048   ;;  %vm435_vm3 = vcmask 64512   ;;  %vm454_vm4 = vcmask 1043456   ;;  %vm843_vm5 = vcmask 392192  }
  0x15   : > { %1074 = vmatpush3.bf16.msra.mxu1 %v1197_v0  ;;  %1077 = vmatprep.mubr.msk.bf16.mxu1 %vm1284_vm0, %v1283_v1  ;;  %s1020_s14 = sshll.u32 %s257_s13, 2  ;;  %s1288_s13 = smov 64   ;;  %vm885_vm6 = vcmask 523264  }
  0x16   : > { %1075 = vmatprep.subr.bf16.mxu1 %v1283_v1  ;;  %1091 = vmatprep.mubr.msk.bf16.mxu0 %vm1284_vm0, %v1283_v1  ;;  %s259_s19 = scalar_lea.vmem %s1540_s0, %s1020_s14  ;;  %s263_s9 = scalar_lea.vmem %s1541_s1, %s1020_s14 }
  0x17   : > { %v265_v4 = vld [vmem:[%s259_s19] sm:$0xf]  ;;  %s1289_s14 = smov 32  }
  0x18   : > { %v266_v6 = vld [vmem:[%s263_s9] sm:$0xf] }
  0x19   : > { %1076 = vmatpush3.bf16.msra.mxu1 %v1198_v2 }
  0x1a   : > { %1081 = vmatprep.subr.bf16.mxu1 %v1283_v1 }
  0x1c   : > { %1078 = vmatmul.mubr.msk.bf16.vlgmr.msra.gmra.mxu1 %vm283_vm1, %v265_v4 }
  0x1d   : > { %1082 = vmatpush3.bf16.msra.mxu1 %v1199_v3  ;;  %1085 = vmatprep.mubr.msk.bf16.mxu1 %vm1284_vm0, %v1283_v1 }
  0x1e   : > { %1083 = vmatprep.subr.bf16.mxu1 %v1283_v1 }
  0x21   : > { %1084 = vmatpush3.bf16.msra.mxu1 %v1200_v5 }
  0x22   : > { %1095 = vmatprep.subr.bf16.mxu1 %v1283_v1 }
  0x24   : > { %1086 = vmatmul.mubr.msk.bf16.vlgmr.msra.gmra.mxu1 %vm283_vm1, %v266_v6 }
  0x25   : > { %1097 = vmatprep.mubr.msk.bf16.mxu1 %vm1284_vm0, %v1283_v1 }
  0xdc   : > { %v321_v7 = vpop.f32.mrf.mxu1 }
  0xdd   : > { %v1412_v8 = vpack.c.bf16 %v321_v7, %v321_v7 }
  0xde   : > { %v1079_v9 = vpop.f32.mrf.mxu1 }
  0xdf   : > { %611 = vrot.lane.b32.xlu1 %v1412_v8, %s1285_s10  ;;  %501 = vrot.lane.b32.xlu0 %v1412_v8, %s1286_s11  ;;  %v393_v10 = vsel %vm388_vm2, %v1412_v8, 0 }
  0xe0   : > { %v324_v11 = vpop.f32.mrf.mxu1  ;;  %1090 = vmatpush3.bf16.xpose.msra.mxu0 %v393_v10 }
  0xe1   : > { %1101 = vmatprep.subr.bf16.mxu0 %v1283_v1 }
  0xe2   : > { %v1080_v12 = vpop.f32.mrf.mxu1 }
  0xe4   : > { %v381_v13 = vpop.f32.mrf.mxu1 }
  0xe5   : > { %v387_v14 = vpack.c.bf16 %v381_v13, %v381_v13 }
  0xe6   : > { %v1087_v15 = vpop.f32.mrf.mxu1 }
  0xe7   : > { %609 = vrot.lane.b32.xlu1 %v387_v14, %s1285_s10  ;;  %499 = vrot.lane.b32.xlu0 %v387_v14, %s1286_s11  ;;  %s253_s10 = sand.u32 1, %s1273_s22  }
  0xe8   : > { %1092 = vmatmul.mubr.msk.bf16.vlgmr.msra.gmra.mxu0 %vm388_vm2, %v387_v14  ;;  %v384_v16 = vpop.f32.mrf.mxu1  ;;  %s1019_s11 = sshll.u32 %s253_s10, 3  ;;  %s931_s20 = scalar_lea.sflag [#allocation3], %s253_s10 }
  0xe9   : > { %1103 = vmatprep.mubr.msk.bf16.mxu0 %vm1284_vm0, %v1283_v1 }
  0xea   : > { %v1088_v17 = vpop.f32.mrf.mxu1 }
  0xeb   : > { %719 = vrot.lane.b32.xlu1 %v387_v14, %s1287_s12  ;;  %721 = vrot.lane.b32.xlu0 %v1412_v8, %s1287_s12 }
 0x151   : > { %v502_v18 = vpop.permute.xlu0 %501  ;;  %v612_v20 = vpop.permute.xlu1 %611 }
 0x152   : > { %v507_v19 = vsel %vm388_vm2, %v502_v18, 0  ;;  %v617_v22 = vsel %vm388_vm2, %v612_v20, 0 }
 0x153   : > { %1102 = vmatpush3.bf16.xpose.msra.mxu0 %v507_v19 }
 0x154   : > { %1113 = vmatprep.subr.bf16.mxu0 %v1283_v1 }
 0x159   : > { %v500_v21 = vpop.permute.xlu0 %499  ;;  %v610_v24 = vpop.permute.xlu1 %609 }
 0x15a   : > { %1104 = vmatmul.mubr.msk.bf16.vlgmr.msra.gmra.mxu0 %vm388_vm2, %v500_v21 }
 0x15b   : > { %1114 = vmatpush3.bf16.xpose.msra.mxu0 %v617_v22  ;;  %1115 = vmatprep.mubr.msk.bf16.mxu0 %vm1284_vm0, %v1283_v1 }
 0x15c   : > { %1125 = vmatprep.subr.bf16.mxu0 %v1283_v1 }
 0x15d   : > { %v722_v23 = vpop.permute.xlu0 %721  ;;  %v720_v26 = vpop.permute.xlu1 %719 }
 0x15e   : > { %v727_v25 = vsel %vm388_vm2, %v722_v23, 0 }
 0x162   : > { %1116 = vmatmul.mubr.msk.bf16.vlgmr.msra.gmra.mxu0 %vm388_vm2, %v610_v24 }
 0x163   : > { %1126 = vmatpush3.bf16.xpose.msra.mxu0 %v727_v25  ;;  %1127 = vmatprep.mubr.msk.bf16.mxu0 %vm1284_vm0, %v1283_v1 }
 0x164   : > { %1137 = vmatprep.subr.bf16.mxu0 %v1283_v1 }
 0x16a   : > { %1128 = vmatmul.mubr.msk.bf16.vlgmr.msra.gmra.mxu0 %vm388_vm2, %v720_v26 }
 0x16b   : > { %1145 = vmatprep.mubr.msk.bf16.mxu0 %vm1284_vm0, %v1283_v1 }
 0x1a8   : > { %v429_v27 = vpop.f32.mrf.mxu0 }
 0x1a9   : > { %v436_v28 = vsel %vm435_vm3, %v429_v27, -inf }
 0x1aa   : > { %437 = vmax.xlane.f32.xlu0 %v436_v28  ;;  %v1093_v29 = vpop.f32.mrf.mxu0 }
 0x1ac   : > { %v432_v30 = vpop.f32.mrf.mxu0 }
 0x1ae   : > { %v1094_v31 = vpop.f32.mrf.mxu0 }
 0x21a   : > { %v543_v32 = vpop.f32.mrf.mxu0 }
 0x21b   : > { %v549_v33 = vsel %vm435_vm3, %v543_v32, -inf }
 0x21c   : > { %550 = vmax.xlane.f32.xlu1 %v549_v33  ;;  %v1105_v34 = vpop.f32.mrf.mxu0  ;;  %v1202_v33 = vld [vmem:[%s1544_s4 + $0x10] sm:$0xff]  }
 0x21d   : > { %v1203_v34 = vld [vmem:[%s1544_s4 + $0x8] sm:$0xff]  }
 0x21e   : > { %v546_v35 = vpop.f32.mrf.mxu0 }
 0x220   : > { %v1106_v36 = vpop.f32.mrf.mxu0 }
 0x222   : > { %v653_v37 = vpop.f32.mrf.mxu0 }
 0x223   : > { %v659_v38 = vsel %vm435_vm3, %v653_v37, -inf }
 0x224   : > { %660 = vmax.xlane.f32.xlu0 %v659_v38  ;;  %v1117_v39 = vpop.f32.mrf.mxu0 }
 0x226   : > { %v656_v40 = vpop.f32.mrf.mxu0 }
 0x228   : > { %v1118_v41 = vpop.f32.mrf.mxu0 }
 0x22a   : > { %v763_v42 = vpop.f32.mrf.mxu0 }
 0x22b   : > { %v769_v43 = vsel %vm435_vm3, %v763_v42, -inf }
 0x22c   : > { %770 = vmax.xlane.f32.xlu0 %v769_v43  ;;  %v1129_v44 = vpop.f32.mrf.mxu0 }
 0x22e   : > { %v766_v45 = vpop.f32.mrf.mxu0 }
 0x230   : > { %v1130_v46 = vpop.f32.mrf.mxu0 }
 0x233   : > { %v438_v47 = vpop.xlane.xlu0 %437 }
 0x234   : > { %v439_v48 = vsub.f32 %v429_v27, %v438_v47 }
 0x236   : > { %v440_v49 = vmul.f32 1.442695, %v439_v48 }
 0x238   : > { %1205 = vpow2.f32 %v440_v49 }
 0x245   : > { %v1206_v50 = vpop.eup %1205 }
 0x246   : > { %v442_v51 = vsel %vm435_vm3, %v1206_v50, 0.0 }
 0x247   : > { %443 = vadd.xlane.f32.xlu1 %v442_v51 }
 0x258   : > { %449 = vrot.lane.b32.xlu1 %v1412_v8, %s1288_s13 }
 0x2a5   : > { %v551_v52 = vpop.xlane.xlu1 %550 }
 0x2a6   : > { %v552_v53 = vsub.f32 %v543_v32, %v551_v52  ;;  %v1201_v32 = vld [vmem:[%s1544_s4 + $0x18] sm:$0xff]  }
 0x2a7   : > { %1138 = vmatpush3.bf16.msra.mxu0 %v1201_v32 }
 0x2a8   : > { %v553_v54 = vmul.f32 1.442695, %v552_v53  ;;  %1139 = vmatprep.subr.bf16.mxu0 %v1283_v1 }
 0x2aa   : > { %1207 = vpow2.f32 %v553_v54  ;;  %v1036_v54 = vld [vmem:[%s1545_s5] ss:$0 sm:$0xff] }
 0x2ab   : > { %1140 = vmatpush3.bf16.msra.mxu0 %v1202_v33 }
 0x2ac   : > { %1141 = vmatprep.subr.bf16.mxu0 %v1283_v1 }
 0x2ad   : > { %v661_v55 = vpop.xlane.xlu0 %660 }
 0x2ae   : > { %v662_v56 = vsub.f32 %v653_v37, %v661_v55  ;;  %v1204_v37 = vld [vmem:[%s1544_s4] sm:$0xff]  }
 0x2af   : > { %1142 = vmatpush3.bf16.msra.mxu0 %v1203_v34 }
 0x2b0   : > { %v663_v57 = vmul.f32 1.442695, %v662_v56  ;;  %1143 = vmatprep.subr.bf16.mxu0 %v1283_v1 }
 0x2b2   : > { %1209 = vpow2.f32 %v663_v57 }
 0x2b3   : > { %1144 = vmatpush3.bf16.msra.mxu0 %v1204_v37 }
 0x2b5   : > { %v771_v58 = vpop.xlane.xlu0 %770 }
 0x2b6   : > { %v772_v59 = vsub.f32 %v763_v42, %v771_v58 }
 0x2b7   : > { %v1208_v60 = vpop.eup %1207 }
 0x2b8   : > { %v773_v61 = vmul.f32 1.442695, %v772_v59  ;;  %v555_v62 = vsel %vm435_vm3, %v1208_v60, 0.0 }
 0x2b9   : > { %556 = vadd.xlane.f32.xlu0 %v555_v62 }
 0x2ba   : > { %1211 = vpow2.f32 %v773_v61 }
 0x2bf   : > { %v1210_v63 = vpop.eup %1209 }
 0x2c0   : > { %v665_v0 = vsel %vm435_vm3, %v1210_v63, 0.0 }
 0x2c1   : > { %666 = vadd.xlane.f32.xlu1 %v665_v0 }
 0x2c7   : > { %v1212_v2 = vpop.eup %1211 }
 0x2c8   : > { %v775_v3 = vsel %vm435_vm3, %v1212_v2, 0.0 }
 0x2c9   : > { %776 = vadd.xlane.f32.xlu0 %v775_v3 }
 0x2d0   : > { %v444_v4 = vpop.xlane.xlu1 %443 }
 0x2d1   : > { %1213 = vrcp.f32 %v444_v4 }
 0x2d2   : > { %671 = vrot.lane.b32.xlu1 %v1412_v8, %s1289_s14 }
 0x2d4   : > { %v450_v5 = vpop.permute.xlu1 %449 }
 0x2d5   : > { %v456_v6 = vsel %vm454_vm4, %v450_v5, 0 }
 0x2d6   : > { %1096 = vmatpush3.bf16.msra.mxu1 %v456_v6  ;;  %781 = vrot.lane.b32.xlu1 %v1412_v8, %s1290_s15 }
 0x2d7   : > { %1107 = vmatprep.subr.bf16.mxu1 %v1283_v1 }
 0x2de   : > { %v1214_v7 = vpop.eup %1213 }
 0x2df   : > { %561 = vrot.lane.b32.xlu0 %v1412_v8, %s1291_s16  ;;  %v446_v9 = vmul.f32 %v1214_v7, %v1206_v50 }
 0x2e1   : > { %v447_v10 = vpack.c.bf16 %v446_v9, %v446_v9 }
 0x2e3   : > { %1098 = vmatmul.mubr.msk.bf16.vlgmr.msra.gmra.mxu1 %vm435_vm3, %v447_v10 }
 0x2e4   : > { %1109 = vmatprep.mubr.msk.bf16.mxu1 %vm1284_vm0, %v1283_v1 }
 0x342   : > { %v557_v11 = vpop.xlane.xlu0 %556 }
 0x343   : > { %1215 = vrcp.f32 %v557_v11 }
 0x34a   : > { %v667_v12 = vpop.xlane.xlu1 %666 }
 0x34b   : > { %1217 = vrcp.f32 %v667_v12 }
 0x34e   : > { %v672_v18 = vpop.permute.xlu1 %671 }
 0x34f   : > { %v677_v20 = vsel %vm454_vm4, %v672_v18, 0 }
 0x350   : > { %v1216_v13 = vpop.eup %1215 }
 0x351   : > { %v559_v15 = vmul.f32 %v1216_v13, %v1208_v60 }
 0x352   : > { %v777_v14 = vpop.xlane.xlu0 %776  ;;  %v782_v22 = vpop.permute.xlu1 %781 }
 0x353   : > { %1219 = vrcp.f32 %v777_v14  ;;  %v560_v8 = vpack.c.bf16 %v559_v15, %v559_v15  ;;  %v787_v25 = vsel %vm454_vm4, %v782_v22, 0 }
 0x356   : > { %v562_v16 = vpop.permute.xlu0 %561 }
 0x357   : > { %v567_v17 = vsel %vm454_vm4, %v562_v16, 0 }
 0x358   : > { %1108 = vmatpush3.bf16.msra.mxu1 %v567_v17  ;;  %v1218_v19 = vpop.eup %1217 }
 0x359   : > { %1119 = vmatprep.subr.bf16.mxu1 %v1283_v1  ;;  %v669_v21 = vmul.f32 %v1218_v19, %v1210_v63 }
 0x35b   : > { %1110 = vmatmul.mubr.msk.bf16.vlgmr.msra.gmra.mxu1 %vm435_vm3, %v560_v8  ;;  %v670_v23 = vpack.c.bf16 %v669_v21, %v669_v21 }
 0x35c   : > { %1120 = vmatpush3.bf16.msra.mxu1 %v677_v20  ;;  %1121 = vmatprep.mubr.msk.bf16.mxu1 %vm1284_vm0, %v1283_v1 }
 0x35d   : > { %1131 = vmatprep.subr.bf16.mxu1 %v1283_v1 }
 0x360   : > { %v1220_v24 = vpop.eup %1219 }
 0x361   : > { %v779_v26 = vmul.f32 %v1220_v24, %v1212_v2 }
 0x363   : > { %1122 = vmatmul.mubr.msk.bf16.vlgmr.msra.gmra.mxu1 %vm435_vm3, %v670_v23  ;;  %v780_v27 = vpack.c.bf16 %v779_v26, %v779_v26 }
 0x364   : > { %1132 = vmatpush3.bf16.msra.mxu1 %v787_v25  ;;  %1133 = vmatprep.mubr.msk.bf16.mxu1 %vm1284_vm0, %v1283_v1 }
 0x36b   : > { %1134 = vmatmul.mubr.msk.bf16.vlgmr.msra.gmra.mxu1 %vm435_vm3, %v780_v27 }
 0x3a3   : > { %v492_v28 = vpop.f32.mrf.mxu1 }
 0x3a5   : > { %v1099_v29 = vpop.f32.mrf.mxu1 }
 0x3a7   : > { %v495_v30 = vpop.f32.mrf.mxu1 }
 0x3a9   : > { %v1100_v31 = vpop.f32.mrf.mxu1 }
 0x41b   : > { %v603_v35 = vpop.f32.mrf.mxu1 }
 0x41c   : > { %830 = vrot.lane.b32.xlu0 %v603_v35, %s1290_s15  ;;  %s255_s15 = scalar_lea.vmem [#allocation2], %s1019_s11 }
 0x41d   : > { %v1111_v36 = vpop.f32.mrf.mxu1 }
 0x41f   : > { %v606_v38 = vpop.f32.mrf.mxu1 }
 0x421   : > { %v1112_v39 = vpop.f32.mrf.mxu1 }
 0x423   : > { %v713_v40 = vpop.f32.mrf.mxu1 }
 0x424   : > { %834 = vrot.lane.b32.xlu1 %v713_v40, %s1289_s14  ;;  %s1043_s14 = sshll.u32 %s1349_s25, 7 }
 0x425   : > { %v1123_v41 = vpop.f32.mrf.mxu1  ;;  %s1498_s19 = scalar_lea.hbm %s1546_s6, %s1043_s14 }
 0x427   : > { %v716_v42 = vpop.f32.mrf.mxu1 }
 0x429   : > { %v1124_v43 = vpop.f32.mrf.mxu1 }
 0x42b   : > { %v823_v44 = vpop.f32.mrf.mxu1 }
 0x42c   : > { %838 = vrot.lane.b32.xlu0 %v823_v44, %s1291_s16  ;;  %s944_s16 = sshll.u32 %s255_s15, 4  ;;  %s1500_s16 = int_to_ptr.vmem [resolvable:$true] %s944_s16 }
 0x42d   : > { %v1135_v45 = vpop.f32.mrf.mxu1  ;;  %s1221_s25 = scalar_lea.vmem %s1500_s16, 128  ;;  %p1228_p0 = scmp.lt.s32.totalorder %s1500_s16, %s1226_s28 }
 0x42e   : > { %p1222_p11 = scmp.ne.s32.totalorder %s1500_s16, %s1221_s25  ;;  %p1229_p1 = scmp.lt.s32.totalorder %s1227_s29, %s1221_s25 }
 0x42f   : > { %v826_v1 = vpop.f32.mrf.mxu1 }
 0x430   : > { %p1223_p12 = pnand %p1222_p11, %p1366_p5  ;;  %p1230_p2 = por %p1229_p1, %p1228_p0 }
 0x431   : > { %v1136_v46 = vpop.f32.mrf.mxu1 }
 0x432   : > { %p1224_p13 = pneg %p1223_p12 }
 0x434   : > { %p1231_p3 = pnand %p1230_p2, %p1224_p13 }
 0x48e   : > { %v831_v47 = vpop.permute.xlu0 %830 }
 0x48f   : > { %v841_v49 = vsel %vm388_vm2, %v492_v28, %v831_v47 }
 0x496   : > { %v835_v48 = vpop.permute.xlu1 %834 }
 0x497   : > { %v842_v50 = vsel %vm283_vm1, %v841_v49, %v835_v48 }
 0x49e   : > { %v839_v51 = vpop.permute.xlu0 %838 }
 0x49f   : > { %v844_v52 = vsel %vm843_vm5, %v842_v50, %v839_v51 }
 0x4a0   : > { %v845_v53 = vpack.c.bf16 %v844_v52, %v844_v52 }
 0x4a2   : > { %1146 = vmatmul.mubr.msk.bf16.vlgmr.msra.gmra.mxu0 %vm885_vm6, %v845_v53 }
 0x562   : > { %v923_v55 = vpop.f32.mrf.mxu0 }
 0x563   : > { %v924_v56 = vadd.f32 %v1036_v54, %v923_v55 }
 0x564   : > { %v1147_v57 = vpop.f32.mrf.mxu0 }
 0x565   : > { %929 = vst.msk [vmem:[%s255_s15] sm:$0xff] %vm283_vm1, %v924_v56 }
 0x566   : > { %v926_v58 = vpop.f32.mrf.mxu0 }
 0x567   : > { %1234 = shalt.err (!%p1231_p3)
}
 0x568   : > { %s1235_s9 = scalar_lea.hbm %s1498_s19, 128  ;;  %s1239_s12 = scalar_lea.hbm %s1546_s6, 256 }
 0x569   : > { %p1236_p4 = scmp.ne.s32.totalorder %s1498_s19, %s1235_s9  ;;  %p1240_p9 = scmp.lt.s32.totalorder %s1498_s19, %s1546_s6 }
 0x56a   : > { %p1241_p10 = scmp.lt.s32.totalorder %s1239_s12, %s1235_s9 }
 0x56b   : > { %p1237_p7 = pnand %p1236_p4, %p1366_p5 }
 0x56c   : > { %p1242_p11 = por %p1241_p10, %p1240_p9 }
 0x56d   : > { %p1238_p8 = pneg %p1237_p7 }
 0x56f   : > { %p1243_p12 = pnand %p1242_p11, %p1238_p8 }
 0x571   : > { %1246 = shalt.err (!%p1243_p12)
}
 0x572   : > { %1149 = dma.vmem_to_hbm [thread:$0]  (%p1366_p5), %s1500_s16, 128, %s1498_s19, %s931_s20   ;;  %v1148_v59 = vpop.f32.mrf.mxu0 }
 0x573 PF: > { %p1155_p13 = scmp.ge.s32.totalorder %s1281_s24, 2  ;;  %s956_s15 = sand.u32 1, %s1269_s21  }
 0x574   : > { %s957_s17 = scalar_lea.sflag [#allocation3], %s956_s15 }
 0x575   : > { %p1152_p0 = pnand %p1155_p13, %p1370_p6 }
 0x577   : > { %p1153_p1 = pneg %p1152_p0 }
 0x579   : > { %1264 = dma.done.wait (%p1153_p1), %s957_s17, 128  }
 0x57a   : > { %1266 = vsyncadd (%p1153_p1), %s957_s17, 4294967168  ;;  %p16_p2 = scmp.ge.s32.totalorder %s1353_s27, 4   ;;  %s1549_s21 = smov %s1273_s22 }
 0x57b   : > { %s1550_s22 = smov %s1277_s23  ;;  %s1551_s23 = smov %s1364_s30 }
 0x57c   : > { %s1552_s24 = smov %s1353_s27  ;;  %18 = sbr.rel (!%p16_p2) target bundleno = 3 (0x3), region = 82 }
 0x581   :  { %962 = vsyncpa [#allocation3], 1 }
 0x582   :  { %964 = vsyncpa [#allocation3 + $0x1], 1 }

</bundles_post_ra>
